<compile_context>
chip_gen: v7x
topology: tpu7x:2x2x1
jax: 0.10.0
libtpu: 0.0.40
codegen_flags: <defaults>
</compile_context>

<pallas_src>
import functools

import jax
import jax.numpy as jnp
from jax import lax
from jax.experimental import pallas as pl
from jax.experimental.pallas import tpu as pltpu


def _round_up(x, m):
    return (x + m - 1) // m * m


def _dsc2d_kernel(x_ref, wc_ref, *rest, kh_sz, kw_sz, wp, c_in, m_cols,
                  n_chunk, has_bias):
    """One batch-chunk per grid step.

    x_ref   : (n_chunk, Cin, flat_len)   channel-major flattened padded images
    wc_ref  : (Cout, T)                  fused depthwise*pointwise weights
    b_ref   : (Cout, 1)                  (only if has_bias)
    o_ref   : (1, Cout, n_chunk*m_cols)  lane-dense output block
    pmat_ref: (T, n_chunk*m_cols)        VMEM scratch: im2col patch matrix
    """
    if has_bias:
        b_ref, o_ref, pmat_ref = rest
    else:
        (o_ref, pmat_ref), b_ref = rest, None

    # im2col with zero relayout: each tap's rows are a contiguous lane window of
    # the flattened channel-major image; every store is lane-dense (m_cols%128==0).
    for b in range(n_chunk):
        for kh in range(kh_sz):
            for kw in range(kw_sz):
                tap = kh * kw_sz + kw
                win = x_ref[b, :, pl.ds(kh * wp + kw, m_cols)]   # (Cin, m_cols)
                pmat_ref[tap * c_in:(tap + 1) * c_in,
                         b * m_cols:(b + 1) * m_cols] = win

    # Single fused MXU matmul: (Cout, T) @ (T, M) -> (Cout, M), f32 accumulation.
    out = lax.dot_general(
        wc_ref[...], pmat_ref[...],
        dimension_numbers=(((1,), (0,)), ((), ())),
        preferred_element_type=jnp.float32)
    if has_bias:
        out = out + b_ref[...].astype(jnp.float32)
    o_ref[0] = out.astype(o_ref.dtype)               # lane-dense (Cout, M) store


def dsc2d(x_nchw, w_dw, w_pw, bias=None, *, stride, padding, compute_dtype=None):
    """Depthwise-separable conv.

    x_nchw : (N, Cin, H, W)
    w_dw   : (KH, KW, Cin)   depthwise weights
    w_pw   : (Cin, Cout)     pointwise weights
    bias   : (Cout,) or None
    returns: (N, Cout, Ho, Wo)  (NCHW, same as PyTorch)
    """
    n, c_in, h, w = x_nchw.shape
    kh, kw = int(w_dw.shape[0]), int(w_dw.shape[1])
    c_out = int(w_pw.shape[1])
    sh, sw = (stride, stride) if isinstance(stride, int) else stride
    ph, pw_ = (padding, padding) if isinstance(padding, int) else padding

    h_out = (h + 2 * ph - kh) // sh + 1
    w_out = (w + 2 * pw_ - kw) // sw + 1
    hp, wp = h + 2 * ph, w + 2 * pw_
    t_dim = kh * kw * c_in

    cdt = jnp.dtype(compute_dtype) if compute_dtype is not None else x_nchw.dtype

    # Output pixel (i, j) lives at column i*sh*wp + j*sw of its image's M block;
    # round the per-image block width to 128 lanes for unmasked stores.
    m_cols = _round_up(h_out * sh * wp, 128)
    # Flattened padded-image length, with enough zero tail that every tap window
    # [kh*wp+kw, kh*wp+kw + m_cols) stays in bounds.
    flat_len = _round_up(max(hp * wp, (kh - 1) * wp + (kw - 1) + m_cols), 128)

    # Batch chunking: >=2 parallel grid steps when possible (v7x has 2 TCs),
    # otherwise one big step (v5e/v6e have a single TC; per-step overhead amortised).
    n_steps = 2 if n >= 2 else 1
    n_chunk = -(-n // n_steps)
    n_padded = n_steps * n_chunk
    m_blk = n_chunk * m_cols

    # ---- wrapper-side glue: pads + reshapes only (no transposes) ----
    x_pad = jnp.pad(x_nchw, ((0, n_padded - n), (0, 0), (ph, ph), (pw_, pw_)))
    x_flat = x_pad.reshape(n_padded, c_in, hp * wp)
    x_flat = jnp.pad(x_flat, ((0, 0), (0, 0), (0, flat_len - hp * wp)))
    x_flat = x_flat.astype(cdt)

    # Exact depthwise*pointwise fusion:
    #   Wc[co, (kh*KW + kw)*Cin + ci] = w_dw[kh, kw, ci] * w_pw[ci, co]
    w_comb = w_dw[:, :, :, None] * w_pw[None, None, :, :]        # (KH,KW,Cin,Cout)
    wc_t = w_comb.reshape(t_dim, c_out).T.astype(cdt)            # (Cout, T)

    has_bias = bias is not None

    kern = functools.partial(
        _dsc2d_kernel, kh_sz=kh, kw_sz=kw, wp=wp, c_in=c_in,
        m_cols=m_cols, n_chunk=n_chunk, has_bias=has_bias)

    in_specs = [
        pl.BlockSpec((n_chunk, c_in, flat_len), lambda i: (i, 0, 0)),
        pl.BlockSpec((c_out, t_dim), lambda i: (0, 0)),
    ]
    inputs = [x_flat, wc_t]
    if has_bias:
        in_specs.append(pl.BlockSpec((c_out, 1), lambda i: (0, 0)))
        inputs.append(bias.reshape(c_out, 1).astype(jnp.float32))

    # VMEM budget: double-buffered input/output blocks + im2col scratch + weights.
    bpe = jnp.dtype(cdt).itemsize
    obpe = jnp.dtype(x_nchw.dtype).itemsize
    block_bytes = (2 * n_chunk * _round_up(c_in, 8) * flat_len * bpe
                   + _round_up(t_dim, 8) * m_blk * bpe
                   + 2 * _round_up(c_out, 8) * m_blk * obpe
                   + _round_up(c_out, 8) * _round_up(t_dim, 128) * bpe
                   + (1 << 16))
    vmem_limit = int(min(64 * 2 ** 20, max(4 * 2 ** 20, 4 * block_bytes)))

    out_flat = pl.pallas_call(
        kern,
        out_shape=jax.ShapeDtypeStruct((n_steps, c_out, m_blk), x_nchw.dtype),
        grid_spec=pltpu.PrefetchScalarGridSpec(
            num_scalar_prefetch=0,
            grid=(n_steps,),
            in_specs=in_specs,
            out_specs=pl.BlockSpec((1, c_out, m_blk), lambda i: (i, 0, 0)),
            scratch_shapes=[pltpu.VMEM((t_dim, m_blk), cdt)],
        ),
        compiler_params=pltpu.CompilerParams(
            dimension_semantics=("parallel",),
            vmem_limit_bytes=vmem_limit),
    )(*inputs)

    # (n_steps, Cout, n_chunk*m_cols) -> (N, Cout, Ho, Wo):
    # reshapes + one moveaxis (size-1 when n_chunk == 1) + a strided column slice
    # that drops the junk (row-boundary / round-to-128) columns.
    out = out_flat.reshape(n_steps, c_out, n_chunk, m_cols)
    out = jnp.moveaxis(out, 2, 1).reshape(n_padded, c_out, m_cols)
    out = out[:, :, :h_out * sh * wp].reshape(n_padded, c_out, h_out, sh * wp)
    out = out[:n, :, :, 0:(w_out - 1) * sw + 1:sw]
    return out


def _reference(x_nchw, w_dw, w_pw, bias, *, stride, padding):
    """Pure-JAX reference via lax.conv_general_dilated (matches PyTorch conv)."""
    c_in = x_nchw.shape[1]
    # depthwise: weights (KH, KW, Cin) -> OIHW with O=Cin, I=1, groups=Cin
    w_dw_oihw = jnp.transpose(w_dw, (2, 0, 1))[:, None, :, :]
    dw = lax.conv_general_dilated(
        x_nchw, w_dw_oihw, window_strides=stride,
        padding=[(padding[0], padding[0]), (padding[1], padding[1])],
        dimension_numbers=("NCHW", "OIHW", "NCHW"),
        feature_group_count=c_in)
    # pointwise: weights (Cin, Cout) -> OIHW (Cout, Cin, 1, 1)
    w_pw_oihw = jnp.transpose(w_pw, (1, 0))[:, :, None, None]
    pw = lax.conv_general_dilated(
        dw, w_pw_oihw, window_strides=(1, 1), padding=[(0, 0), (0, 0)],
        dimension_numbers=("NCHW", "OIHW", "NCHW"))
    return pw + bias[None, :, None, None]


if __name__ == "__main__":
    # Shapes consistent with DSC2d(in_ch=4, out_ch=8, kernel=3, stride=1, padding=1)
    N, C_IN, H, W = 2, 4, 16, 16
    C_OUT, K, STRIDE, PAD = 8, 3, (1, 1), (1, 1)
    USE_BIAS = False  # matches module default

    key = jax.random.PRNGKey(0)
    k_x, k_dw, k_pw, k_b = jax.random.split(key, 4)

    x = jax.random.normal(k_x, (N, C_IN, H, W), dtype=jnp.float32)
    w_dw = jax.random.normal(k_dw, (K, K, C_IN), dtype=jnp.float32) * 0.1
    w_pw = jax.random.normal(k_pw, (C_IN, C_OUT), dtype=jnp.float32) * 0.1
    bias = (jax.random.normal(k_b, (C_OUT,), dtype=jnp.float32) * 0.1
            if USE_BIAS else None)

    out = dsc2d(x, w_dw, w_pw, bias, stride=STRIDE, padding=PAD)
    out = jax.block_until_ready(out)

    bias_ref = bias if bias is not None else jnp.zeros((C_OUT,), jnp.float32)
    ref = _reference(x, w_dw, w_pw, bias_ref, stride=STRIDE, padding=PAD)
    assert out.shape == (N, C_OUT, H, W), out.shape
    assert jnp.allclose(out, ref, atol=1e-4, rtol=1e-4), "mismatch vs reference"

    print("KERNEL_OK")
</pallas_src>

<mosaic_0001>
module attributes {stable_mosaic.version = 11 : i64} {
  func.func @_dsc2d_kernel(%arg0: i32, %arg1: memref<1x4x512xf32, #tpu.memory_space<vmem>>, %arg2: memref<8x36xf32, #tpu.memory_space<vmem>>, %arg3: memref<1x8x384xf32, #tpu.memory_space<vmem>>, %arg4: memref<36x384xf32, #tpu.memory_space<vmem>>) attributes {dimension_semantics = [#tpu.dimension_semantics<parallel>], iteration_bounds = array<i64: 2>, scalar_prefetch = 0 : i64, scratch_operands = 1 : i64, tpu.core_type = #tpu.core_type<tc>, window_params = [{transform_indices = @transform_0, window_bounds = array<i64: 1, 4, 512>}, {pipeline_mode = #tpu.pipeline_mode<synchronous>, transform_indices = @transform_1, window_bounds = array<i64: 8, 36>}, {transform_indices = @transform_2, window_bounds = array<i64: 1, 8, 384>}]} {
    %c0 = arith.constant 0 : index
    %c0_0 = arith.constant 0 : index
    %c0_1 = arith.constant 0 : index
    %0 = vector.load %arg1[%c0, %c0_0, %c0_1] : memref<1x4x512xf32, #tpu.memory_space<vmem>>, vector<1x4x384xf32>
    %1 = vector.shape_cast %0 : vector<1x4x384xf32> to vector<4x384xf32>
    %c0_2 = arith.constant 0 : index
    %c0_3 = arith.constant 0 : index
    %2 = vector.load %arg4[%c0_2, %c0_3] : memref<36x384xf32, #tpu.memory_space<vmem>>, vector<4x384xf32>
    tpu.vector_store %arg4[%c0_2, %c0_3], %1 {strides = array<i32>} : memref<36x384xf32, #tpu.memory_space<vmem>>, vector<4x384xf32>,
    %c0_4 = arith.constant 0 : index
    %c0_5 = arith.constant 0 : index
    %c1 = arith.constant 1 : index
    %3 = vector.load %arg1[%c0_4, %c0_5, %c1] : memref<1x4x512xf32, #tpu.memory_space<vmem>>, vector<1x4x384xf32>
    %4 = vector.shape_cast %3 : vector<1x4x384xf32> to vector<4x384xf32>
    %c4 = arith.constant 4 : index
    %c0_6 = arith.constant 0 : index
    %5 = vector.load %arg4[%c4, %c0_6] : memref<36x384xf32, #tpu.memory_space<vmem>>, vector<4x384xf32>
    tpu.vector_store %arg4[%c4, %c0_6], %4 {strides = array<i32>} : memref<36x384xf32, #tpu.memory_space<vmem>>, vector<4x384xf32>,
    %c0_7 = arith.constant 0 : index
    %c0_8 = arith.constant 0 : index
    %c2 = arith.constant 2 : index
    %6 = vector.load %arg1[%c0_7, %c0_8, %c2] : memref<1x4x512xf32, #tpu.memory_space<vmem>>, vector<1x4x384xf32>
    %7 = vector.shape_cast %6 : vector<1x4x384xf32> to vector<4x384xf32>
    %c8 = arith.constant 8 : index
    %c0_9 = arith.constant 0 : index
    %8 = vector.load %arg4[%c8, %c0_9] : memref<36x384xf32, #tpu.memory_space<vmem>>, vector<4x384xf32>
    tpu.vector_store %arg4[%c8, %c0_9], %7 {strides = array<i32>} : memref<36x384xf32, #tpu.memory_space<vmem>>, vector<4x384xf32>,
    %c0_10 = arith.constant 0 : index
    %c0_11 = arith.constant 0 : index
    %c18 = arith.constant 18 : index
    %9 = vector.load %arg1[%c0_10, %c0_11, %c18] : memref<1x4x512xf32, #tpu.memory_space<vmem>>, vector<1x4x384xf32>
    %10 = vector.shape_cast %9 : vector<1x4x384xf32> to vector<4x384xf32>
    %c12 = arith.constant 12 : index
    %c0_12 = arith.constant 0 : index
    %11 = vector.load %arg4[%c12, %c0_12] : memref<36x384xf32, #tpu.memory_space<vmem>>, vector<4x384xf32>
    tpu.vector_store %arg4[%c12, %c0_12], %10 {strides = array<i32>} : memref<36x384xf32, #tpu.memory_space<vmem>>, vector<4x384xf32>,
    %c0_13 = arith.constant 0 : index
    %c0_14 = arith.constant 0 : index
    %c19 = arith.constant 19 : index
    %12 = vector.load %arg1[%c0_13, %c0_14, %c19] : memref<1x4x512xf32, #tpu.memory_space<vmem>>, vector<1x4x384xf32>
    %13 = vector.shape_cast %12 : vector<1x4x384xf32> to vector<4x384xf32>
    %c16 = arith.constant 16 : index
    %c0_15 = arith.constant 0 : index
    %14 = vector.load %arg4[%c16, %c0_15] : memref<36x384xf32, #tpu.memory_space<vmem>>, vector<4x384xf32>
    tpu.vector_store %arg4[%c16, %c0_15], %13 {strides = array<i32>} : memref<36x384xf32, #tpu.memory_space<vmem>>, vector<4x384xf32>,
    %c0_16 = arith.constant 0 : index
    %c0_17 = arith.constant 0 : index
    %c20 = arith.constant 20 : index
    %15 = vector.load %arg1[%c0_16, %c0_17, %c20] : memref<1x4x512xf32, #tpu.memory_space<vmem>>, vector<1x4x384xf32>
    %16 = vector.shape_cast %15 : vector<1x4x384xf32> to vector<4x384xf32>
    %c20_18 = arith.constant 20 : index
    %c0_19 = arith.constant 0 : index
    %17 = vector.load %arg4[%c20_18, %c0_19] : memref<36x384xf32, #tpu.memory_space<vmem>>, vector<4x384xf32>
    tpu.vector_store %arg4[%c20_18, %c0_19], %16 {strides = array<i32>} : memref<36x384xf32, #tpu.memory_space<vmem>>, vector<4x384xf32>,
    %c0_20 = arith.constant 0 : index
    %c0_21 = arith.constant 0 : index
    %c36 = arith.constant 36 : index
    %18 = vector.load %arg1[%c0_20, %c0_21, %c36] : memref<1x4x512xf32, #tpu.memory_space<vmem>>, vector<1x4x384xf32>
    %19 = vector.shape_cast %18 : vector<1x4x384xf32> to vector<4x384xf32>
    %c24 = arith.constant 24 : index
    %c0_22 = arith.constant 0 : index
    %20 = vector.load %arg4[%c24, %c0_22] : memref<36x384xf32, #tpu.memory_space<vmem>>, vector<4x384xf32>
    tpu.vector_store %arg4[%c24, %c0_22], %19 {strides = array<i32>} : memref<36x384xf32, #tpu.memory_space<vmem>>, vector<4x384xf32>,
    %c0_23 = arith.constant 0 : index
    %c0_24 = arith.constant 0 : index
    %c37 = arith.constant 37 : index
    %21 = vector.load %arg1[%c0_23, %c0_24, %c37] : memref<1x4x512xf32, #tpu.memory_space<vmem>>, vector<1x4x384xf32>
    %22 = vector.shape_cast %21 : vector<1x4x384xf32> to vector<4x384xf32>
    %c28 = arith.constant 28 : index
    %c0_25 = arith.constant 0 : index
    %23 = vector.load %arg4[%c28, %c0_25] : memref<36x384xf32, #tpu.memory_space<vmem>>, vector<4x384xf32>
    tpu.vector_store %arg4[%c28, %c0_25], %22 {strides = array<i32>} : memref<36x384xf32, #tpu.memory_space<vmem>>, vector<4x384xf32>,
    %c0_26 = arith.constant 0 : index
    %c0_27 = arith.constant 0 : index
    %c38 = arith.constant 38 : index
    %24 = vector.load %arg1[%c0_26, %c0_27, %c38] : memref<1x4x512xf32, #tpu.memory_space<vmem>>, vector<1x4x384xf32>
    %25 = vector.shape_cast %24 : vector<1x4x384xf32> to vector<4x384xf32>
    %c32 = arith.constant 32 : index
    %c0_28 = arith.constant 0 : index
    %26 = vector.load %arg4[%c32, %c0_28] : memref<36x384xf32, #tpu.memory_space<vmem>>, vector<4x384xf32>
    tpu.vector_store %arg4[%c32, %c0_28], %25 {strides = array<i32>} : memref<36x384xf32, #tpu.memory_space<vmem>>, vector<4x384xf32>,
    %c0_29 = arith.constant 0 : index
    %c0_30 = arith.constant 0 : index
    %27 = vector.load %arg2[%c0_29, %c0_30] : memref<8x36xf32, #tpu.memory_space<vmem>>, vector<8x36xf32>
    %c0_31 = arith.constant 0 : index
    %c0_32 = arith.constant 0 : index
    %28 = vector.load %arg4[%c0_31, %c0_32] : memref<36x384xf32, #tpu.memory_space<vmem>>, vector<36x384xf32>
    %cst = arith.constant dense<0.000000e+00> : vector<8x384xf32>
    %29 = tpu.matmul %27, %28, %cst {dimension_numbers = #tpu.dot_dimension_numbers<[1], [0], [0], [1], [0, 0, 1, 1], [], []>} : vector<8x36xf32>, vector<36x384xf32>, vector<8x384xf32> -> vector<8x384xf32>
    %c0_33 = arith.constant 0 : index
    %c0_34 = arith.constant 0 : index
    %c0_35 = arith.constant 0 : index
    %30 = vector.load %arg3[%c0_33, %c0_34, %c0_35] : memref<1x8x384xf32, #tpu.memory_space<vmem>>, vector<1x8x384xf32>
    %31 = vector.shape_cast %30 : vector<1x8x384xf32> to vector<8x384xf32>
    %32 = vector.shape_cast %29 : vector<8x384xf32> to vector<1x8x384xf32>
    tpu.vector_store %arg3[%c0_33, %c0_34, %c0_35], %32 {strides = array<i32>} : memref<1x8x384xf32, #tpu.memory_space<vmem>>, vector<1x8x384xf32>,
    return
  }
  func.func @transform_0(%arg0: i32) -> (i32, i32, i32) {
    %c0_i32 = arith.constant 0 : i32
    %c0_i32_0 = arith.constant 0 : i32
    %c0_i32_1 = arith.constant 0 : i32
    return %arg0, %c0_i32, %c0_i32_0 : i32, i32, i32
  }
  func.func @transform_1(%arg0: i32) -> (i32, i32) {
    %c0_i32 = arith.constant 0 : i32
    %c0_i32_0 = arith.constant 0 : i32
    %c0_i32_1 = arith.constant 0 : i32
    return %c0_i32, %c0_i32_0 : i32, i32
  }
  func.func @transform_2(%arg0: i32) -> (i32, i32, i32) {
    %c0_i32 = arith.constant 0 : i32
    %c0_i32_0 = arith.constant 0 : i32
    %c0_i32_1 = arith.constant 0 : i32
    return %arg0, %c0_i32, %c0_i32_0 : i32, i32, i32
  }
}

</mosaic_0001>

<bundles_post_ra>
// kernel: tpu_custom_call.1
= control target key start
LH: loop header
LB: loop body
LE: loop exit
PB: predicated region body
PF: predicated region fallthrough
CT: control target
= control target key end

     0   :  { %7 = vsyncpa [#allocation4], 0  ;;  %s1152_s0 = inlined_call_operand.hbm [shape: f32[2,4,512], index: 0, kind: input, shape index: {}]   ;;  %s1153_s1 = inlined_call_operand.hbm [shape: f32[8,36], index: 1, kind: input, shape index: {}]   ;;  %s1154_s2 = inlined_call_operand.hbm [shape: f32[2,8,384], index: 2, kind: output, shape index: {}]  }
   0x1   :  { %9 = vsyncpa [#allocation4 + $0x1], 0 }
   0x2   :  { %10 = vsyncpa [#allocation7], 0 }
   0x3   :  { %11 = vsyncpa [#allocation5], 0 }
   0x4   :  { %13 = vsyncpa [#allocation5 + $0x1], 0  ;;  %s927_s9 = smov 0   ;;  %s929_s10 = smov 0  }
   0x5   :  { %s931_s11 = smov 0   ;;  %s933_s12 = smov 0  }
   0x6 LB: > { %s948_s13 = sadd.s32 4294967295, %s896_s12   ;;  %s642_s14 = sadd.s32 4294967294, %s896_s12   ;;  %s896_s12 = sphi %s933_s12, %s1178_s12   ;;  %s892_s11 = sphi %s931_s11, %s1177_s11   ;;  %s888_s10 = sphi %s929_s10, %s1176_s10   ;;  %s884_s9 = sphi %s927_s9, %s1175_s9  }
   0x7   : > { %p39_p0 = scmp.ne.s32.totalorder %s888_s10, %s884_s9  ;;  %p1155_p1 = scmp.eq.s32.totalorder %s948_s13, 0 }
   0x8   : > { %p90_p3 = scmp.eq.s32.totalorder %s642_s14, 1  ;;  %p643_p5 = scmp.ge.s32.totalorder %s896_s12, 1 }
   0x9   : > { %p957_p4 = por %p1155_p1, %p39_p0  ;;  %p97_p7 = scmp.lt.s32.totalorder %s896_s12, 3 }
   0xa   : > { %p962_p6 = por %p90_p3, %p39_p0  ;;  %s898_s18 = smov [#allocation6]  }
   0xb   : > { %s1158_s15 = scalar_select %p957_p4, 1, 0 }
   0xc   : > { %s1159_s16 = scalar_select %p962_p6, 1, 0 }
   0xd   : > { %p967_p8 = pnand %p643_p5, %p97_p7  ;;  %s110_s19 = sshll.u32 %s898_s18, 4  ;;  %s111_s19 = int_to_ptr.vmem [resolvable:$true] %s110_s19 }
   0xe   : > { %s975_s20 = sadd.s32 1, %s896_s12   ;;  %s26_s24 = sadd.s32 1, %s892_s11 }
   0xf   : > { %s1160_s17 = scalar_select %p967_p8, 1, 0 }
  0x10   : > { %p704_p10 = pneg %p967_p8  ;;  %s23_s22 = ssub.s32 %s896_s12, %s975_s20 }
  0x11   : > { %p985_p12 = scmp.eq.s32.totalorder %s23_s22, 0  ;;  %s768_s27 = scalar_lea.hbm %s1153_s1, 128 }
  0x12   : > { %p979_p11 = pnand %p704_p10, %p1155_p1  ;;  %p769_p0 = scmp.ne.s32.totalorder %s1153_s1, %s768_s27 }
  0x13   : > { %s1162_s23 = scalar_select %p985_p12, 1, 0 }
  0x14   : > { %p770_p3 = pneg %p979_p11  ;;  %p775_p10 = scmp.lt.u32.totalorder %s768_s27, %s1153_s1 }
  0x16   : > { %p771_p5 = pnand %p770_p3, %p769_p0 }
  0x18   : > { %p772_p7 = pneg %p771_p5 }
  0x1a   : > { %p777_p9 = pnand %p775_p10, %p772_p7 }
  0x1c   : > { %780 = shalt.err (!%p777_p9)
}
  0x1d   : > { %s781_s4 = scalar_lea.vmem %s111_s19, 128  ;;  %p789_p6 = scmp.lt.s32.totalorder %s111_s19, %s111_s19 }
  0x1e   : > { %p782_p1 = scmp.ne.s32.totalorder %s111_s19, %s781_s4  ;;  %p790_p4 = scmp.lt.s32.totalorder %s781_s4, %s781_s4 }
  0x20   : > { %p784_p2 = pnand %p782_p1, %p770_p3  ;;  %p791_p8 = por %p790_p4, %p789_p6 }
  0x22   : > { %p785_p13 = pneg %p784_p2 }
  0x24   : > { %p792_p12 = pnand %p791_p8, %p785_p13 }
  0x26   : > { %795 = shalt.err (!%p792_p12)
}
  0x27   : > { %707 = dma.hbm_to_vmem [thread:$0]  (!%p979_p11), %s1153_s1, 128, %s111_s19, [#allocation7]  }
  0x28   : > { %p1163_p1 = scmp.ne.s32.totalorder %s1162_s23, 0  ;;  %p34_p2 = scmp.eq.s32.totalorder %s896_s12, 0 }
  0x29   : > { %p1164_p4 = scmp.ne.s32.totalorder %s892_s11, %s888_s10  ;;  %p1165_p6 = scmp.eq.s32.totalorder %s948_s13, 1 }
  0x2a   : > { %s1011_s7 = scalar_select %p1163_p1, %s892_s11, %s26_s24  }
  0x2b   : > { %p1019_p8 = por %p1165_p6, %p1164_p4  ;;  %p717_p9 = scmp.lt.s32.totalorder %s896_s12, 2 }
  0x2c   : > { %s121_s14 = sand.u32 1, %s892_s11   ;;  %p1167_p12 = pmov %p1164_p4 }
  0x2d   : > { %s646_s18 = sshll.u32 %s121_s14, 4  ;;  %s660_s21 = sshll.u32 %s896_s12, 8 }
  0x2e   : > { %p35_p13 = por %p34_p2, %p1167_p12  ;;  %s1032_s19 = scalar_lea.hbm %s1152_s0, %s660_s21 }
  0x2f   : > { %s125_s23 = scalar_lea.vmem [#allocation3], %s646_s18  ;;  %s122_s27 = scalar_lea.sflag [#allocation4], %s121_s14 }
  0x30   : > { %s133_s24 = sshll.u32 %s125_s23, 4  ;;  %p1034_p11 = pnand %p717_p9, %p35_p13  ;;  %s1038_s24 = int_to_ptr.vmem [resolvable:$true] %s133_s24 }
  0x31   : > { %s796_s28 = scalar_lea.hbm %s1032_s19, 256  ;;  %s801_s3 = scalar_lea.hbm %s1152_s0, 512 }
  0x32   : > { %p797_p0 = scmp.ne.s32.totalorder %s1032_s19, %s796_s28  ;;  %p798_p3 = pneg %p1034_p11 }
  0x33   : > { %p802_p10 = scmp.lt.u32.totalorder %s1032_s19, %s1152_s0  ;;  %p803_p1 = scmp.lt.u32.totalorder %s801_s3, %s796_s28 }
  0x34   : > { %p799_p5 = pnand %p798_p3, %p797_p0  ;;  %p805_p4 = scmp.lt.u32.totalorder %s796_s28, %s1032_s19 }
  0x35   : > { %p804_p2 = por %p803_p1, %p802_p10 }
  0x36   : > { %p800_p7 = pneg %p799_p5 }
  0x37   : > { %p806_p6 = por %p805_p4, %p804_p2 }
  0x39   : > { %p807_p9 = pnand %p806_p6, %p800_p7 }
  0x3b   : > { %810 = shalt.err (!%p807_p9)
}
  0x3c   : > { %s811_s6 = scalar_lea.vmem %s1038_s24, 256  ;;  %s899_s14 = smov [#allocation3]  }
  0x3d   : > { %p812_p12 = scmp.ne.s32.totalorder %s1038_s24, %s811_s6  ;;  %s816_s18 = sshll.u32 %s899_s14, 4  ;;  %s817_s18 = int_to_ptr.vmem [resolvable:$false] %s816_s18 }
  0x3e   : > { %s818_s21 = scalar_lea.vmem %s817_s18, 512  ;;  %p819_p5 = scmp.lt.s32.totalorder %s1038_s24, %s817_s18 }
  0x3f   : > { %p814_p13 = pnand %p812_p12, %p798_p3  ;;  %p820_p10 = scmp.lt.s32.totalorder %s818_s21, %s811_s6 }
  0x41   : > { %p815_p0 = pneg %p814_p13  ;;  %p821_p1 = por %p820_p10, %p819_p5 }
  0x43   : > { %p822_p2 = pnand %p821_p1, %p815_p0 }
  0x45   : > { %825 = shalt.err (!%p822_p2)
}
  0x46   : > { %711 = dma.hbm_to_vmem [thread:$0]  (!%p1034_p11), %s1032_s19, 256, %s1038_s24, %s122_s27  }
  0x47   : > { %p1169_p7 = scmp.ne.s32.totalorder %s1160_s17, 0 }
  0x48   : > { %s1068_s22 = sand.u32 (!%p1169_p7), 1, %s888_s10   ;;  %p1170_p3 = scmp.ne.s32.totalorder (!%p1169_p7), %s1158_s15, 0 }
  0x49   : > { %142 = sbr.rel (%p1169_p7) target bundleno = 497 (0x1f1), region = 28  ;;  %s650_s25 = sshll.u32 (!%p1169_p7), %s1068_s22, 4 }
  0x4a   : > { %s145_s23 = scalar_lea.sflag (!%p1169_p7), [#allocation4], %s1068_s22  ;;  %s148_s28 = scalar_lea.vmem (!%p1169_p7), [#allocation3], %s650_s25 }
  0x50   : > { %871 = dma.done.wait (%p1170_p3), %s145_s23, 256  }
  0x51   : > { %873 = vsyncadd (%p1170_p3), %s145_s23, 4294967040  ;;  %p1171_p4 = scmp.eq.s32.totalorder %s948_s13, 0 }
  0x53   : > { %875 = dma.done.wait (%p1171_p4), [#allocation7], 128   ;;  %p1172_p11 = pmov %p1171_p4 }
  0x54   : > { %v206_v0 = vld [vmem:[%s148_s28 + $0x8] sm:$0xff]  ;;  %v181_v1 = vld [vmem:[%s148_s28] sm:$0xff]  ;;  %s900_s17 = smov 126   ;;  %s901_s19 = smov 127   ;;  %v903_v7 = vmov 0.0|0.0   ;;  %v908_v8 = vmov 0.0  }
  0x55   : > { %877 = vsyncadd (%p1172_p11), [#allocation7], 4294967168  ;;  %215 = vrot.lane.b32.xlu1 %v206_v0, %s900_s17  ;;  %189 = vrot.lane.b32.xlu0 %v181_v1, %s901_s19  ;;  %v209_v2 = vcombine.high %v181_v1, %v181_v1  ;;  %178 = vst [vmem:[#allocation2] sm:$0xf] %v181_v1  ;;  %v174_v3 = vld [vmem:[%s148_s28 + $0x8] sm:$0xf]  ;;  %v234_v4 = vcombine.low %v206_v0, %v206_v0 }
  0x56   : > { %s902_s24 = smov 110   ;;  %180 = vst [vmem:[#allocation2 + $0x10] sm:$0xf] %v174_v3  ;;  %v185_v5 = vcombine.low %v181_v1, %v181_v1  ;;  %v210_v6 = vcombine.high %v206_v0, %v206_v0  ;;  %688 = vmatprep.subr.bf16.mxu1 %v903_v7  ;;  %s904_s15 = smov 109   ;;  %467 = vmatprep.mubr.f32.mxu0 %v908_v8  ;;  %vm910_vm0 = vmmov 0   ;;  %vm219_vm1 = vcmask 1031168  }
  0x57   : > { %179 = vst [vmem:[#allocation2 + $0x8] sm:$0xf] %v209_v2  ;;  %s905_s26 = smov 108   ;;  %s906_s27 = smov 92   ;;  %677 = vmatprep.mubr.msk.f32.mxu1 %vm910_vm0, %v908_v8  ;;  %vm243_vm2 = vcmask 900096   ;;  %vm195_vm3 = vcmask 1039360  }
  0x58   : > { %s907_s29 = smov 91   ;;  %s909_s30 = smov 90   ;;  %vm267_vm4 = vcmask 891904   ;;  %vm291_vm5 = vcmask 883712   ;;  %vm315_vm6 = vcmask 752640   ;;  %vm339_vm7 = vcmask 744448  }
  0x59   : > { %213 = vrot.lane.b32.xlu1 %v209_v2, %s900_s17  ;;  %237 = vrot.lane.b32.xlu0 %v181_v1, %s902_s24  ;;  %vm363_vm8 = vcmask 736256   ;;  %vm393_vm9 = vcmask 1043456   ;;  %vm389_vm10 = vcmask 293888   ;;  %s694_s3 = smul.u32 24, %s1068_s22  ;;  %s548_s25 = scalar_lea.sflag [#allocation5], %s1068_s22 }
  0x5a   : > { %s695_s6 = smul.u32 384, %s948_s13  ;;  %s911_s13 = smov [#allocation8]  }
  0x5b   : > { %s172_s4 = scalar_lea.vmem [#allocation8], %s694_s3  ;;  %s830_s28 = sshll.u32 %s911_s13, 4  ;;  %s831_s28 = int_to_ptr.vmem [resolvable:$false] %s830_s28 }
  0x5c   : > { %s562_s5 = sshll.u32 %s172_s4, 4  ;;  %s1110_s21 = scalar_lea.hbm %s1154_s2, %s695_s6  ;;  %s1105_s5 = int_to_ptr.vmem [resolvable:$true] %s562_s5 }
  0x5d   : > { %239 = vrot.lane.b32.xlu1 %v234_v4, %s902_s24  ;;  %191 = vrot.lane.b32.xlu0 %v234_v4, %s901_s19  ;;  %s826_s23 = scalar_lea.vmem %s1105_s5, 384  ;;  %p833_p13 = scmp.lt.s32.totalorder %s1105_s5, %s831_s28 }
  0x5e   : > { %p827_p6 = scmp.ne.s32.totalorder %s1105_s5, %s826_s23 }
  0x60   : > { %p828_p9 = pnand %p827_p6, %p1019_p8 }
  0x61   : > { %211 = vrot.lane.b32.xlu1 %v181_v1, %s900_s17  ;;  %187 = vrot.lane.b32.xlu0 %v185_v5, %s901_s19 }
  0x62   : > { %p829_p12 = pneg %p828_p9 }
  0x65   : > { %193 = vrot.lane.b32.xlu1 %v206_v0, %s901_s19  ;;  %235 = vrot.lane.b32.xlu0 %v185_v5, %s902_s24 }
  0x69   : > { %241 = vrot.lane.b32.xlu1 %v206_v0, %s902_s24  ;;  %217 = vrot.lane.b32.xlu0 %v210_v6, %s900_s17  ;;  %s832_s17 = scalar_lea.vmem %s831_s28, 768 }
  0x6a   : > { %p834_p0 = scmp.lt.s32.totalorder %s832_s17, %s826_s23 }
  0x6c   : > { %p835_p5 = por %p834_p0, %p833_p13 }
  0x6d   : > { %263 = vrot.lane.b32.xlu1 %v206_v0, %s904_s15  ;;  %261 = vrot.lane.b32.xlu0 %v209_v2, %s904_s15 }
  0x6e   : > { %p836_p10 = pnand %p835_p5, %p829_p12 }
  0x71   : > { %287 = vrot.lane.b32.xlu1 %v234_v4, %s905_s26  ;;  %285 = vrot.lane.b32.xlu0 %v181_v1, %s905_s26 }
  0x75   : > { %311 = vrot.lane.b32.xlu1 %v206_v0, %s906_s27  ;;  %309 = vrot.lane.b32.xlu0 %v209_v2, %s906_s27 }
  0x79   : > { %335 = vrot.lane.b32.xlu1 %v234_v4, %s907_s29  ;;  %333 = vrot.lane.b32.xlu0 %v181_v1, %s907_s29 }
  0x7d   : > { %283 = vrot.lane.b32.xlu1 %v185_v5, %s905_s26  ;;  %259 = vrot.lane.b32.xlu0 %v181_v1, %s904_s15 }
  0x81   : > { %331 = vrot.lane.b32.xlu1 %v185_v5, %s907_s29  ;;  %307 = vrot.lane.b32.xlu0 %v181_v1, %s906_s27 }
  0x85   : > { %289 = vrot.lane.b32.xlu1 %v206_v0, %s905_s26  ;;  %265 = vrot.lane.b32.xlu0 %v210_v6, %s904_s15 }
  0x89   : > { %337 = vrot.lane.b32.xlu1 %v206_v0, %s907_s29  ;;  %313 = vrot.lane.b32.xlu0 %v210_v6, %s906_s27 }
  0x8d   : > { %359 = vrot.lane.b32.xlu1 %v206_v0, %s909_s30  ;;  %357 = vrot.lane.b32.xlu0 %v209_v2, %s909_s30 }
  0x91   : > { %361 = vrot.lane.b32.xlu1 %v210_v6, %s909_s30  ;;  %355 = vrot.lane.b32.xlu0 %v181_v1, %s909_s30 }
  0xc7   : > { %v216_v9 = vpop.permute.xlu1 %215  ;;  %v190_v10 = vpop.permute.xlu0 %189 }
  0xcb   : > { %v214_v11 = vpop.permute.xlu1 %213  ;;  %v238_v12 = vpop.permute.xlu0 %237 }
  0xcc   : > { %v221_v13 = vsel %vm219_vm1, %v214_v11, %v216_v9 }
  0xcd   : > { %227 = vst [vmem:[#allocation2 + $0x20] sm:$0xf] %v221_v13 }
  0xcf   : > { %v240_v14 = vpop.permute.xlu1 %239  ;;  %v192_v15 = vpop.permute.xlu0 %191 }
  0xd0   : > { %v245_v16 = vsel %vm243_vm2, %v238_v12, %v240_v14  ;;  %v197_v17 = vsel %vm195_vm3, %v190_v10, %v192_v15 }
  0xd1   : > { %251 = vst [vmem:[#allocation2 + $0x20] sm:$0xf0] %v245_v16  ;;  %203 = vst [vmem:[#allocation2 + $0x8] sm:$0xf0] %v197_v17 }
  0xd3   : > { %v212_v18 = vpop.permute.xlu1 %211  ;;  %v188_v19 = vpop.permute.xlu0 %187 }
  0xd4   : > { %v220_v20 = vsel %vm219_vm1, %v212_v18, %v214_v11  ;;  %v196_v21 = vsel %vm195_vm3, %v188_v19, %v190_v10 }
  0xd5   : > { %226 = vst [vmem:[#allocation2 + $0x18] sm:$0xf] %v220_v20  ;;  %202 = vst [vmem:[#allocation2] sm:$0xf0] %v196_v21  ;;  %v373_v21 = vld [vmem:[#allocation6] sm:$0xff] }
  0xd7   : > { %v194_v22 = vpop.permute.xlu1 %193  ;;  %v236_v23 = vpop.permute.xlu0 %235 }
  0xd8   : > { %v198_v24 = vsel %vm195_vm3, %v192_v15, %v194_v22  ;;  %v244_v25 = vsel %vm243_vm2, %v236_v23, %v238_v12  ;;  %v375_v26 = vld [vmem:[#allocation2 + $0x8] sm:$0xff]  ;;  %v378_v27 = vld [vmem:[#allocation2 + $0x20] sm:$0xff] }
  0xd9   : > { %204 = vst [vmem:[#allocation2 + $0x10] sm:$0xf0] %v198_v24  ;;  %250 = vst [vmem:[#allocation2 + $0x18] sm:$0xf0] %v244_v25  ;;  %v680_v28 = vpack.c.bf16 %v378_v27, %v375_v26 }
  0xdb   : > { %v242_v29 = vpop.permute.xlu1 %241  ;;  %v218_v30 = vpop.permute.xlu0 %217  ;;  %681 = vmatprep.subr.bf16.mxu0 %v680_v28 }
  0xdc   : > { %v246_v31 = vsel %vm243_vm2, %v240_v14, %v242_v29  ;;  %v222_v32 = vsel %vm219_vm1, %v216_v9, %v218_v30  ;;  %v374_v36 = vld [vmem:[#allocation2] sm:$0xff] }
  0xdd   : > { %252 = vst [vmem:[#allocation2 + $0x28] sm:$0xf0] %v246_v31  ;;  %228 = vst [vmem:[#allocation2 + $0x28] sm:$0xf] %v222_v32 }
  0xdf   : > { %v264_v33 = vpop.permute.xlu1 %263  ;;  %v262_v34 = vpop.permute.xlu0 %261 }
  0xe0   : > { %v269_v35 = vsel %vm267_vm4, %v262_v34, %v264_v33  ;;  %v377_v37 = vld [vmem:[#allocation2 + $0x18] sm:$0xff]  ;;  %v376_v42 = vld [vmem:[#allocation2 + $0x10] sm:$0xff] }
  0xe1   : > { %275 = vst [vmem:[#allocation2 + $0x38] sm:$0xf] %v269_v35  ;;  %v682_v38 = vpack.c.bf16 %v377_v37, %v374_v36 }
  0xe3   : > { %v288_v39 = vpop.permute.xlu1 %287  ;;  %v286_v40 = vpop.permute.xlu0 %285  ;;  %683 = vmatpush1.bf16.msra.mxu0 %v682_v38 }
  0xe4   : > { %v293_v41 = vsel %vm291_vm5, %v286_v40, %v288_v39  ;;  %v379_v43 = vld [vmem:[#allocation2 + $0x28] sm:$0xff] }
  0xe5   : > { %299 = vst [vmem:[#allocation2 + $0x38] sm:$0xf0] %v293_v41  ;;  %v689_v44 = vpack.c.bf16 %v379_v43, %v376_v42 }
  0xe7   : > { %v312_v45 = vpop.permute.xlu1 %311  ;;  %v310_v46 = vpop.permute.xlu0 %309  ;;  %690 = vmatpush3.bf16.msra.mxu1 %v689_v44 }
  0xe8   : > { %v317_v47 = vsel %vm315_vm6, %v310_v46, %v312_v45  ;;  %691 = vmatprep.subr.bf16.mxu1 %v903_v7 }
  0xe9   : > { %323 = vst [vmem:[#allocation2 + $0x50] sm:$0xf] %v317_v47 }
  0xeb   : > { %v336_v48 = vpop.permute.xlu1 %335  ;;  %v334_v49 = vpop.permute.xlu0 %333 }
  0xec   : > { %v341_v50 = vsel %vm339_vm7, %v334_v49, %v336_v48  ;;  %v381_v59 = vld [vmem:[#allocation2 + $0x38] sm:$0xff] }
  0xed   : > { %347 = vst [vmem:[#allocation2 + $0x50] sm:$0xf0] %v341_v50 }
  0xef   : > { %v284_v51 = vpop.permute.xlu1 %283  ;;  %v260_v52 = vpop.permute.xlu0 %259 }
  0xf0   : > { %v292_v53 = vsel %vm291_vm5, %v284_v51, %v286_v40  ;;  %v268_v54 = vsel %vm267_vm4, %v260_v52, %v262_v34 }
  0xf1   : > { %298 = vst [vmem:[#allocation2 + $0x30] sm:$0xf0] %v292_v53  ;;  %274 = vst [vmem:[#allocation2 + $0x30] sm:$0xf] %v268_v54 }
  0xf3   : > { %v332_v55 = vpop.permute.xlu1 %331  ;;  %v308_v56 = vpop.permute.xlu0 %307 }
  0xf4   : > { %v340_v57 = vsel %vm339_vm7, %v332_v55, %v334_v49  ;;  %v316_v58 = vsel %vm315_vm6, %v308_v56, %v310_v46  ;;  %v384_v60 = vld [vmem:[#allocation2 + $0x50] sm:$0xff] }
  0xf5   : > { %346 = vst [vmem:[#allocation2 + $0x48] sm:$0xf0] %v340_v57  ;;  %322 = vst [vmem:[#allocation2 + $0x48] sm:$0xf] %v316_v58  ;;  %v684_v61 = vpack.c.bf16 %v384_v60, %v381_v59 }
  0xf7   : > { %v290_v62 = vpop.permute.xlu1 %289  ;;  %v266_v63 = vpop.permute.xlu0 %265  ;;  %685 = vmatprep.subr.bf16.mxu0 %v684_v61 }
  0xf8   : > { %v294_v0 = vsel %vm291_vm5, %v288_v39, %v290_v62  ;;  %v270_v1 = vsel %vm267_vm4, %v264_v33, %v266_v63  ;;  %v380_v6 = vld [vmem:[#allocation2 + $0x30] sm:$0xff] }
  0xf9   : > { %300 = vst [vmem:[#allocation2 + $0x40] sm:$0xf0] %v294_v0  ;;  %276 = vst [vmem:[#allocation2 + $0x40] sm:$0xf] %v270_v1 }
  0xfb   : > { %v338_v2 = vpop.permute.xlu1 %337  ;;  %v314_v3 = vpop.permute.xlu0 %313 }
  0xfc   : > { %v342_v4 = vsel %vm339_vm7, %v336_v48, %v338_v2  ;;  %v318_v5 = vsel %vm315_vm6, %v312_v45, %v314_v3  ;;  %v383_v7 = vld [vmem:[#allocation2 + $0x48] sm:$0xff] }
  0xfd   : > { %348 = vst [vmem:[#allocation2 + $0x58] sm:$0xf0] %v342_v4  ;;  %324 = vst [vmem:[#allocation2 + $0x58] sm:$0xf] %v318_v5  ;;  %v686_v9 = vpack.c.bf16 %v383_v7, %v380_v6 }
  0xff   : > { %v360_v10 = vpop.permute.xlu1 %359  ;;  %v358_v11 = vpop.permute.xlu0 %357  ;;  %687 = vmatpush1.bf16.msra.mxu0 %v686_v9 }
 0x100   : > { %v365_v12 = vsel %vm363_vm8, %v358_v11, %v360_v10  ;;  %v382_v17 = vld [vmem:[#allocation2 + $0x40] sm:$0xff] }
 0x101   : > { %371 = vst [vmem:[#allocation2 + $0x68] sm:$0xf] %v365_v12 }
 0x103   : > { %v362_v13 = vpop.permute.xlu1 %361  ;;  %v356_v14 = vpop.permute.xlu0 %355 }
 0x104   : > { %v366_v15 = vsel %vm363_vm8, %v360_v10, %v362_v13  ;;  %v364_v16 = vsel %vm363_vm8, %v356_v14, %v358_v11  ;;  %v385_v18 = vld [vmem:[#allocation2 + $0x58] sm:$0xff] }
 0x105   : > { %372 = vst [vmem:[#allocation2 + $0x70] sm:$0xf] %v366_v15  ;;  %370 = vst [vmem:[#allocation2 + $0x60] sm:$0xf] %v364_v16  ;;  %v692_v19 = vpack.c.bf16 %v385_v18, %v382_v17 }
 0x107   : > { %693 = vmatpush3.bf16.msra.mxu1 %v692_v19 }
 0x108   : > { %v387_v20 = vld [vmem:[#allocation2 + $0x68] sm:$0xf]  ;;  %675 = vmatprep.subr.mxu1 %v908_v8 }
 0x109   : > { %652 = vmatprep.subr.msk.mxu0 %vm393_vm9, %v387_v20 }
 0x10c   : > { %v386_v22 = vld [vmem:[#allocation2 + $0x60] sm:$0xf]  ;;  %v388_v23 = vld [vmem:[#allocation2 + $0x70] sm:$0xf] }
 0x10d   : > { %653 = vmatpush1.msk.msra.mxu0 %vm393_vm9, %v386_v22  ;;  %676 = vmatpush3.msk.msra.mxu1 %vm393_vm9, %v388_v23 }
 0x10e   : > { %654 = vmatmul.mubr.msk.f32.vlgmr.msra.gmra.mrb[0].mxu0 %vm389_vm10, %v373_v21  ;;  %678 = vmatmul.mubr.msk.f32.vlgmr.msra.gmra.mrb[0].mxu1 %vm389_vm10, %v373_v21 }
 0x1e1   : > { %v469_v8 = vpop.f32.mrb[0].mxu0  ;;  %v540_v24 = vpop.f32.mrb[0].mxu1 }
 0x1e2   : > { %544 = vst [vmem:[%s172_s4] sm:$0xff] %v469_v8  ;;  %546 = vst [vmem:[%s172_s4 + $0x10] sm:$0xff] %v540_v24  ;;  %v471_v25 = vpop.f32.mrb[1].mxu0  ;;  %v679_v26 = vpop.f32.mrb[1].mxu1 }
 0x1e3   : > { %545 = vst [vmem:[%s172_s4 + $0x8] sm:$0xff] %v471_v25 }
 0x1e4   : > { %839 = shalt.err (!%p836_p10)
}
 0x1e5   : > { %s840_s22 = scalar_lea.hbm %s1110_s21, 384  ;;  %s844_s15 = scalar_lea.hbm %s1154_s2, 768 }
 0x1e6   : > { %p841_p1 = scmp.ne.s32.totalorder %s1110_s21, %s840_s22  ;;  %p845_p3 = scmp.lt.u32.totalorder %s1110_s21, %s1154_s2 }
 0x1e7   : > { %p846_p4 = scmp.lt.u32.totalorder %s844_s15, %s840_s22  ;;  %p848_p6 = scmp.lt.u32.totalorder %s840_s22, %s1110_s21 }
 0x1e8   : > { %p842_p2 = pnand %p841_p1, %p1019_p8 }
 0x1e9   : > { %p847_p11 = por %p846_p4, %p845_p3 }
 0x1ea   : > { %p843_p7 = pneg %p842_p2 }
 0x1eb   : > { %p849_p9 = por %p848_p6, %p847_p11 }
 0x1ed   : > { %p850_p12 = pnand %p849_p9, %p843_p7 }
 0x1ef   : > { %853 = shalt.err (!%p850_p12)
}
 0x1f0   : > { %702 = dma.vmem_to_hbm [thread:$0]  (%p1019_p8), %s1105_s5, 384, %s1110_s21, %s548_s25  }
 0x1f1 PF: > { %s574_s29 = sand.u32 1, %s884_s9   ;;  %p1173_p13 = scmp.ne.s32.totalorder %s1159_s16, 0 }
 0x1f2   : > { %p1174_p0 = scmp.ge.s32.totalorder %s896_s12, 2  ;;  %s575_s30 = scalar_lea.sflag [#allocation5], %s574_s29 }
 0x1f4   : > { %p713_p5 = pnand %p1174_p0, %p1173_p13 }
 0x1f6   : > { %879 = dma.done.wait (!%p713_p5), %s575_s30, 384  }
 0x1f7   : > { %881 = vsyncadd (!%p713_p5), %s575_s30, 4294966912  ;;  %p16_p10 = scmp.ge.s32.totalorder %s975_s20, 4   ;;  %s1175_s9 = smov %s888_s10 }
 0x1f8   : > { %s1176_s10 = smov %s892_s11  ;;  %s1177_s11 = smov %s1011_s7 }
 0x1f9   : > { %s1178_s12 = smov %s975_s20  ;;  %18 = sbr.rel (!%p16_p10) target bundleno = 6 (0x6), region = 77 }
 0x200   :  { %580 = vsyncpa [#allocation4], 1 }
 0x201   :  { %582 = vsyncpa [#allocation4 + $0x1], 1 }
 0x202   :  { %583 = vsyncpa [#allocation7], 1 }
 0x203   :  { %584 = vsyncpa [#allocation5], 1 }
 0x204   :  { %586 = vsyncpa [#allocation5 + $0x1], 1 }

</bundles_post_ra>
